<compile_context>
chip_gen: v7x
topology: tpu7x:2x2x1
jax: 0.10.0
libtpu: 0.0.40
codegen_flags: <defaults>
</compile_context>

<pallas_src>
import functools

import jax
import jax.numpy as jnp
from jax import lax
from jax.experimental import pallas as pl
from jax.experimental.pallas import tpu as pltpu


def _mpnn_edge_kernel(dst_ref,               # VMEM (1, et)  int32 per-tile dst ids
                      efeat_ref, fsrc_ref,   # VMEM (et, H)  per-tile (compute dtype)
                      rep_ref, til_ref,      # VMEM (H, H*H) constant 0/1 (resident)
                      w2_ref,                # VMEM (H*H, H)              (resident)
                      out_ref,               # VMEM (N_pad, H) f32 resident partial sum
                      *, compute_dtype):
    tile = pl.program_id(1)

    # zero this core's resident partial-sum accumulator at the start of its sweep
    @pl.when(tile == 0)
    def _init():
        out_ref[...] = jnp.zeros_like(out_ref)

    et = efeat_ref.shape[0]
    n_pad = out_ref.shape[0]

    ef = efeat_ref[...]                                                   # [et, H]
    fs = fsrc_ref[...]                                                    # [et, H]

    # per-edge outer product z[e, m*H+k] = ef[e,m] * fs[e,k], built on the MXU
    # (lane-dense width H*H; no reshapes, no per-k broadcasts)
    a = jnp.dot(ef, rep_ref[...], preferred_element_type=jnp.float32)     # a[e,m*H+k]=ef[e,m]
    b = jnp.dot(fs, til_ref[...], preferred_element_type=jnp.float32)     # b[e,m*H+k]=fs[e,k]
    z = (a * b).astype(compute_dtype)                                     # f32 VPU multiply

    # per-edge messages: single MXU matmul with K = H*H
    msg = jnp.dot(z, w2_ref[...], preferred_element_type=jnp.float32)     # [et, H] f32

    # one-hot MXU scatter-add over the edge axis:
    #   P_T[n, e] = (n == dst[e]);  out += P_T @ msg   -> [N_pad, H]
    # Padded edges carry dst = -1, so their one-hot column is all zeros (no-op).
    dst = dst_ref[...]                                                    # (1, et) int32
    node_ids = lax.broadcasted_iota(jnp.int32, (n_pad, et), 0)            # (N_pad, et)
    p_t = (node_ids == dst).astype(compute_dtype)                         # (N_pad, et)
    out_ref[...] += jnp.dot(p_t, msg.astype(compute_dtype),
                            preferred_element_type=jnp.float32)


def mpnn_layer(feat, efeat, w_lin, bias, src, dst, num_nodes, *,
               aggr="mean", residual=True, edge_tile=2048, num_cores=1,
               compute_dtype=jnp.float32):
    """feat: [N,H], efeat: [E,H], w_lin: [H*H, H] (PyTorch Linear weight, no bias),
    bias: [H], src/dst: [E] int32 edge endpoints.

    compute_dtype: dtype of the MXU operands (use jnp.bfloat16 on v6e/v7x);
    accumulation is always f32.  num_cores > 1 adds a leading "parallel" grid axis
    (v7x megacore); partial sums are combined in the wrapper."""
    N = int(num_nodes)
    H = feat.shape[1]
    E = efeat.shape[0]
    assert feat.shape[0] == N, "feat must have num_nodes rows"

    f32 = jnp.float32
    feat = feat.astype(f32)
    efeat = efeat.astype(f32)
    bias = bias.astype(f32)
    src = src.astype(jnp.int32)
    dst = dst.astype(jnp.int32)

    # ---- graph glue: all O(E) / O(N) native XLA, no dense E x N matrices ----
    feat_src = jnp.take(feat, src, axis=0)                 # [E, H] gather
    # TODO(synk): for very large E, gather src rows in-kernel (scalar-prefetched
    # src + batched DMA) instead of materializing feat_src in HBM.
    deg = jnp.zeros((N,), f32).at[dst].add(1.0)            # in-degree
    if aggr == "mean":
        dinv = jnp.where(deg > 0, 1.0 / jnp.maximum(deg, 1.0), 0.0)
    elif aggr == "sum":
        dinv = jnp.ones_like(deg)
    else:
        # TODO(synk): 'max' aggregator needs a segment-max reducer; only
        # 'sum'/'mean' are implemented in the kernel.
        raise KeyError("Aggregator type %s not recognized" % aggr)

    # edge_func weight rearranged so msg = z @ W2 with z[e, m*H+k] = ef[e,m]*fs[e,k]:
    #   W2[m*H + k, j] = w_lin[k*H + j, m]
    w2 = (w_lin.astype(f32)
          .reshape(H, H, H).transpose(2, 0, 1).reshape(H * H, H))
    # constant 0/1 broadcast matrices used to build z on the MXU (exact in bf16)
    rep_m = jnp.kron(jnp.eye(H, dtype=f32), jnp.ones((1, H), f32))   # [H, H*H]
    til_m = jnp.kron(jnp.ones((1, H), f32), jnp.eye(H, dtype=f32))   # [H, H*H]

    cdt = compute_dtype

    # ---- edge tiling (multiple of 8); padded edges get dst = -1 -> no-op ----
    # Per-tile VMEM (double-buffered inputs + the (et, H*H) z and (N_pad, et) P_T
    # intermediates): at et=2048, H=16, f32 this is a few MiB -- fine on v5e/v6e's
    # 128 MiB; cap et around 1024-2048 (and/or use bf16) on v7x's 64 MiB.
    et = max(8, ((int(edge_tile) + 7) // 8) * 8)
    num_cores = max(1, int(num_cores))
    chunk = et * num_cores
    e_pad = ((E + chunk - 1) // chunk) * chunk
    pad_e = e_pad - E
    n_tiles = e_pad // et
    tiles_per_core = n_tiles // num_cores

    efeat_p = jnp.pad(efeat, ((0, pad_e), (0, 0))).astype(cdt)            # [E_pad, H]
    fsrc_p = jnp.pad(feat_src, ((0, pad_e), (0, 0))).astype(cdt)          # [E_pad, H]
    dst_p = jnp.pad(dst, (0, pad_e), constant_values=-1)                  # [E_pad]
    dst_p = dst_p.reshape(n_tiles, 1, et)                                 # lanes-major

    n_pad = max(8, ((N + 7) // 8) * 8)
    # TODO(synk): for N beyond ~32-64k nodes the (N_pad, et) one-hot tile gets large;
    # add a node-block grid axis (or a sorted-by-dst segment scheme) in that regime.

    kernel = functools.partial(_mpnn_edge_kernel, compute_dtype=cdt)

    def edge_idx(c, i):
        return c * tiles_per_core + i

    grid_spec = pltpu.PrefetchScalarGridSpec(
        num_scalar_prefetch=0,
        grid=(num_cores, tiles_per_core),
        in_specs=[
            pl.BlockSpec((None, 1, et), lambda c, i: (edge_idx(c, i), 0, 0)),  # dst tile
            pl.BlockSpec((et, H), lambda c, i: (edge_idx(c, i), 0)),           # efeat tile
            pl.BlockSpec((et, H), lambda c, i: (edge_idx(c, i), 0)),           # src feats
            pl.BlockSpec((H, H * H), lambda c, i: (0, 0)),                     # rep_m
            pl.BlockSpec((H, H * H), lambda c, i: (0, 0)),                     # til_m
            pl.BlockSpec((H * H, H), lambda c, i: (0, 0)),                     # W2
        ],
        out_specs=pl.BlockSpec((None, n_pad, H), lambda c, i: (c, 0, 0)),      # per-core sum
    )

    partial_sums = pl.pallas_call(
        kernel,
        out_shape=jax.ShapeDtypeStruct((num_cores, n_pad, H), f32),
        grid_spec=grid_spec,
        compiler_params=pltpu.CompilerParams(
            dimension_semantics=("parallel", "arbitrary"),   # cores x edge tiles
        ),
    )(dst_p, efeat_p, fsrc_p,
      rep_m.astype(cdt), til_m.astype(cdt), w2.astype(cdt))

    # Epilogue (mean, residual Identity, bias) in the wrapper: frees the resident
    # feat/dinv/bias VMEM buffers for the whole grid at the cost of one N*H pass.
    neigh = partial_sums.sum(axis=0)[:N] * dinv[:, None]
    out = neigh + bias[None, :]
    if residual:
        out = out + feat
    return out


def mpnn_reference(feat, efeat, w_lin, bias, src, dst, num_nodes, residual=True):
    """Pure-JAX reference mirroring NNConv(mean, residual=Identity, bias)."""
    N, H = feat.shape
    W_e = (efeat @ w_lin.T).reshape(-1, H, H)                  # [E, H, H]
    msg = jnp.einsum("ek,ekj->ej", feat[src], W_e)             # [E, H]
    ssum = jnp.zeros((N, H), jnp.float32).at[dst].add(msg)
    deg = jnp.zeros((N,), jnp.float32).at[dst].add(1.0)
    neigh = jnp.where(deg[:, None] > 0,
                      ssum / jnp.maximum(deg, 1.0)[:, None], 0.0)
    out = neigh + bias[None, :]
    if residual:
        out = out + feat
    return out


if __name__ == "__main__":
    N, E, H = 8, 32, 16   # nodes, edges, hidden_dim

    key = jax.random.PRNGKey(0)
    k_feat, k_efeat, k_w, k_b, k_src, k_dst = jax.random.split(key, 6)

    feat = jax.random.normal(k_feat, (N, H), jnp.float32)
    efeat = jax.random.normal(k_efeat, (E, H), jnp.float32)
    # edge_func = nn.Linear(H, H*H, bias=False): weight shape [H*H, H]
    w_lin = jax.random.normal(k_w, (H * H, H), jnp.float32) * (1.0 / jnp.sqrt(H))
    bias = jax.random.normal(k_b, (H,), jnp.float32) * 0.1
    src = jax.random.randint(k_src, (E,), 0, N, jnp.int32)
    dst = jax.random.randint(k_dst, (E,), 0, N, jnp.int32)

    ref = mpnn_reference(feat, efeat, w_lin, bias, src, dst, N)

    # 1) f32 operands, single core, small edge tile so the multi-tile accumulation
    #    grid is actually exercised; must match the f32 reference tightly.
    out = mpnn_layer(feat, efeat, w_lin, bias, src, dst, N,
                     aggr="mean", residual=True, edge_tile=8, num_cores=1,
                     compute_dtype=jnp.float32)
    out = jax.block_until_ready(out)
    assert out.shape == (N, H)
    err = float(jnp.max(jnp.abs(out - ref)))
    assert jnp.allclose(out, ref, atol=1e-3, rtol=1e-3), \
        "f32 mismatch vs reference, max abs err = %g" % err

    # 2) bf16 MXU operands (f32 accumulation) with the 2-way core grid axis
    #    exercised; K = H*H = 256 reduction in bf16 vs an f32 reference, so the
    #    tolerance is correspondingly looser.
    out_bf = mpnn_layer(feat, efeat, w_lin, bias, src, dst, N,
                        aggr="mean", residual=True, edge_tile=8, num_cores=2,
                        compute_dtype=jnp.bfloat16)
    out_bf = jax.block_until_ready(out_bf)
    err_bf = float(jnp.max(jnp.abs(out_bf - ref)))
    assert jnp.allclose(out_bf, ref, atol=2.5e-1, rtol=5e-2), \
        "bf16 mismatch vs reference, max abs err = %g" % err_bf

    print("KERNEL_OK")
</pallas_src>

<mosaic_0001>
module attributes {stable_mosaic.version = 11 : i64} {
  func.func @_mpnn_edge_kernel(%arg0: i32, %arg1: i32, %arg2: memref<1x1x8xi32, #tpu.memory_space<vmem>>, %arg3: memref<8x16xf32, #tpu.memory_space<vmem>>, %arg4: memref<8x16xf32, #tpu.memory_space<vmem>>, %arg5: memref<16x256xf32, #tpu.memory_space<vmem>>, %arg6: memref<16x256xf32, #tpu.memory_space<vmem>>, %arg7: memref<256x16xf32, #tpu.memory_space<vmem>>, %arg8: memref<1x8x16xf32, #tpu.memory_space<vmem>>) attributes {dimension_semantics = [#tpu.dimension_semantics<parallel>, #tpu.dimension_semantics<arbitrary>], iteration_bounds = array<i64: 1, 4>, scalar_prefetch = 0 : i64, scratch_operands = 0 : i64, tpu.core_type = #tpu.core_type<tc>, window_params = [{transform_indices = @transform_0, window_bounds = array<i64: 1, 1, 8>}, {transform_indices = @transform_1, window_bounds = array<i64: 8, 16>}, {transform_indices = @transform_2, window_bounds = array<i64: 8, 16>}, {pipeline_mode = #tpu.pipeline_mode<synchronous>, transform_indices = @transform_3, window_bounds = array<i64: 16, 256>}, {pipeline_mode = #tpu.pipeline_mode<synchronous>, transform_indices = @transform_4, window_bounds = array<i64: 16, 256>}, {pipeline_mode = #tpu.pipeline_mode<synchronous>, transform_indices = @transform_5, window_bounds = array<i64: 256, 16>}, {transform_indices = @transform_6, window_bounds = array<i64: 1, 8, 16>}]} {
    %c0_i32 = arith.constant 0 : i32
    %0 = arith.cmpi eq, %arg1, %c0_i32 : i32
    %1 = arith.extui %0 : i1 to i32
    %c0_i32_0 = arith.constant 0 : i32
    %2 = arith.cmpi ne, %1, %c0_i32_0 : i32
    scf.if %2 {
      %cst_22 = arith.constant 0.000000e+00 : f32
      %26 = vector.broadcast %cst_22 : f32 to vector<8x16xf32>
      %c0_23 = arith.constant 0 : index
      %c0_24 = arith.constant 0 : index
      %c0_25 = arith.constant 0 : index
      %27 = vector.load %arg8[%c0_23, %c0_24, %c0_25] : memref<1x8x16xf32, #tpu.memory_space<vmem>>, vector<1x8x16xf32>
      %28 = vector.shape_cast %27 : vector<1x8x16xf32> to vector<8x16xf32>
      %29 = vector.shape_cast %26 : vector<8x16xf32> to vector<1x8x16xf32>
      tpu.vector_store %arg8[%c0_23, %c0_24, %c0_25], %29 {strides = array<i32>} : memref<1x8x16xf32, #tpu.memory_space<vmem>>, vector<1x8x16xf32>,
    } else {
    }
    %c0 = arith.constant 0 : index
    %c0_1 = arith.constant 0 : index
    %3 = vector.load %arg3[%c0, %c0_1] : memref<8x16xf32, #tpu.memory_space<vmem>>, vector<8x16xf32>
    %c0_2 = arith.constant 0 : index
    %c0_3 = arith.constant 0 : index
    %4 = vector.load %arg4[%c0_2, %c0_3] : memref<8x16xf32, #tpu.memory_space<vmem>>, vector<8x16xf32>
    %c0_4 = arith.constant 0 : index
    %c0_5 = arith.constant 0 : index
    %5 = vector.load %arg5[%c0_4, %c0_5] : memref<16x256xf32, #tpu.memory_space<vmem>>, vector<16x256xf32>
    %cst = arith.constant dense<0.000000e+00> : vector<8x256xf32>
    %6 = tpu.matmul %3, %5, %cst {dimension_numbers = #tpu.dot_dimension_numbers<[1], [0], [0], [1], [0, 0, 1, 1], [], []>} : vector<8x16xf32>, vector<16x256xf32>, vector<8x256xf32> -> vector<8x256xf32>
    %c0_6 = arith.constant 0 : index
    %c0_7 = arith.constant 0 : index
    %7 = vector.load %arg6[%c0_6, %c0_7] : memref<16x256xf32, #tpu.memory_space<vmem>>, vector<16x256xf32>
    %cst_8 = arith.constant dense<0.000000e+00> : vector<8x256xf32>
    %8 = tpu.matmul %4, %7, %cst_8 {dimension_numbers = #tpu.dot_dimension_numbers<[1], [0], [0], [1], [0, 0, 1, 1], [], []>} : vector<8x16xf32>, vector<16x256xf32>, vector<8x256xf32> -> vector<8x256xf32>
    %9 = arith.mulf %6, %8 : vector<8x256xf32>
    %c0_9 = arith.constant 0 : index
    %c0_10 = arith.constant 0 : index
    %10 = vector.load %arg7[%c0_9, %c0_10] : memref<256x16xf32, #tpu.memory_space<vmem>>, vector<256x16xf32>
    %cst_11 = arith.constant dense<0.000000e+00> : vector<8x16xf32>
    %11 = tpu.matmul %9, %10, %cst_11 {dimension_numbers = #tpu.dot_dimension_numbers<[1], [0], [0], [1], [0, 0, 1, 1], [], []>} : vector<8x256xf32>, vector<256x16xf32>, vector<8x16xf32> -> vector<8x16xf32>
    %c0_12 = arith.constant 0 : index
    %c0_13 = arith.constant 0 : index
    %c0_14 = arith.constant 0 : index
    %12 = vector.load %arg2[%c0_12, %c0_13, %c0_14] : memref<1x1x8xi32, #tpu.memory_space<vmem>>, vector<1x1x8xi32>
    %13 = vector.shape_cast %12 : vector<1x1x8xi32> to vector<1x8xi32>
    %14 = tpu.iota {dimensions = array<i32: 0>} : vector<8x8xi32>
    %15 = vector.broadcast %13 : vector<1x8xi32> to vector<8x8xi32>
    %16 = arith.cmpi eq, %14, %15 : vector<8x8xi32>
    %17 = arith.extui %16 : vector<8x8xi1> to vector<8x8xi32>
    %18 = arith.sitofp %17 : vector<8x8xi32> to vector<8x8xf32>
    %c0_15 = arith.constant 0 : index
    %c0_16 = arith.constant 0 : index
    %c0_17 = arith.constant 0 : index
    %19 = vector.load %arg8[%c0_15, %c0_16, %c0_17] : memref<1x8x16xf32, #tpu.memory_space<vmem>>, vector<1x8x16xf32>
    %20 = vector.shape_cast %19 : vector<1x8x16xf32> to vector<8x16xf32>
    %cst_18 = arith.constant dense<0.000000e+00> : vector<8x16xf32>
    %21 = tpu.matmul %18, %11, %cst_18 {dimension_numbers = #tpu.dot_dimension_numbers<[1], [0], [0], [1], [0, 0, 1, 1], [], []>} : vector<8x8xf32>, vector<8x16xf32>, vector<8x16xf32> -> vector<8x16xf32>
    %22 = arith.addf %20, %21 : vector<8x16xf32>
    %c0_19 = arith.constant 0 : index
    %c0_20 = arith.constant 0 : index
    %c0_21 = arith.constant 0 : index
    %23 = vector.load %arg8[%c0_19, %c0_20, %c0_21] : memref<1x8x16xf32, #tpu.memory_space<vmem>>, vector<1x8x16xf32>
    %24 = vector.shape_cast %23 : vector<1x8x16xf32> to vector<8x16xf32>
    %25 = vector.shape_cast %22 : vector<8x16xf32> to vector<1x8x16xf32>
    tpu.vector_store %arg8[%c0_19, %c0_20, %c0_21], %25 {strides = array<i32>} : memref<1x8x16xf32, #tpu.memory_space<vmem>>, vector<1x8x16xf32>,
    return
  }
  func.func @transform_0(%arg0: i32, %arg1: i32) -> (i32, i32, i32) {
    %c4_i32 = arith.constant 4 : i32
    %0 = arith.muli %arg0, %c4_i32 : i32
    %1 = arith.addi %0, %arg1 : i32
    %c0_i32 = arith.constant 0 : i32
    %c0_i32_0 = arith.constant 0 : i32
    %c0_i32_1 = arith.constant 0 : i32
    return %1, %c0_i32, %c0_i32_0 : i32, i32, i32
  }
  func.func @transform_1(%arg0: i32, %arg1: i32) -> (i32, i32) {
    %c4_i32 = arith.constant 4 : i32
    %0 = arith.muli %arg0, %c4_i32 : i32
    %1 = arith.addi %0, %arg1 : i32
    %c0_i32 = arith.constant 0 : i32
    %c0_i32_0 = arith.constant 0 : i32
    return %1, %c0_i32 : i32, i32
  }
  func.func @transform_2(%arg0: i32, %arg1: i32) -> (i32, i32) {
    %c4_i32 = arith.constant 4 : i32
    %0 = arith.muli %arg0, %c4_i32 : i32
    %1 = arith.addi %0, %arg1 : i32
    %c0_i32 = arith.constant 0 : i32
    %c0_i32_0 = arith.constant 0 : i32
    return %1, %c0_i32 : i32, i32
  }
  func.func @transform_3(%arg0: i32, %arg1: i32) -> (i32, i32) {
    %c0_i32 = arith.constant 0 : i32
    %c0_i32_0 = arith.constant 0 : i32
    %c0_i32_1 = arith.constant 0 : i32
    return %c0_i32, %c0_i32_0 : i32, i32
  }
  func.func @transform_4(%arg0: i32, %arg1: i32) -> (i32, i32) {
    %c0_i32 = arith.constant 0 : i32
    %c0_i32_0 = arith.constant 0 : i32
    %c0_i32_1 = arith.constant 0 : i32
    return %c0_i32, %c0_i32_0 : i32, i32
  }
  func.func @transform_5(%arg0: i32, %arg1: i32) -> (i32, i32) {
    %c0_i32 = arith.constant 0 : i32
    %c0_i32_0 = arith.constant 0 : i32
    %c0_i32_1 = arith.constant 0 : i32
    return %c0_i32, %c0_i32_0 : i32, i32
  }
  func.func @transform_6(%arg0: i32, %arg1: i32) -> (i32, i32, i32) {
    %c0_i32 = arith.constant 0 : i32
    %c0_i32_0 = arith.constant 0 : i32
    %c0_i32_1 = arith.constant 0 : i32
    return %arg0, %c0_i32, %c0_i32_0 : i32, i32, i32
  }
}

</mosaic_0001>

<bundles_post_ra>
// kernel: tpu_custom_call.1
= control target key start
LH: loop header
LB: loop body
LE: loop exit
PB: predicated region body
PF: predicated region fallthrough
CT: control target
= control target key end

     0   :  { %11 = vsyncpa [#allocation3], 0  ;;  %s986_s21 = smov 0   ;;  %s988_s22 = smov 0   ;;  %s1191_s0 = inlined_call_operand.vmem [shape: s32[4,1,8], index: 0, kind: input, shape index: {}]   ;;  %s1192_s1 = inlined_call_operand.vmem [shape: f32[32,16], index: 1, kind: input, shape index: {}]   ;;  %s1193_s2 = inlined_call_operand.vmem [shape: f32[32,16], index: 2, kind: input, shape index: {}]   ;;  %s1194_s3 = inlined_call_operand.vmem [shape: f32[16,256], index: 3, kind: input, shape index: {}]   ;;  %s1195_s4 = inlined_call_operand.vmem [shape: f32[16,256], index: 4, kind: input, shape index: {}]   ;;  %s1196_s5 = inlined_call_operand.vmem [shape: f32[256,16], index: 5, kind: input, shape index: {}]   ;;  %s1197_s6 = inlined_call_operand.hbm [shape: f32[1,8,16], index: 6, kind: output, shape index: {}]  }
   0x1   :  { %s990_s23 = smov 0  }
   0x2 LB: > { %s761_s24 = sadd.s32 4294967295, %s945_s23   ;;  %s26_s25 = sadd.s32 1, %s941_s22  ;;  %s945_s23 = sphi %s990_s23, %s17_s23   ;;  %s941_s22 = sphi %s988_s22, %s1200_s22   ;;  %s937_s21 = sphi %s986_s21, %s1199_s21  }
   0x3   : > { %p27_p0 = scmp.ge.s32.totalorder %s26_s25, 4  ;;  %p764_p1 = scmp.ge.s32.totalorder %s945_s23, 1 }
   0x4   : > { %p265_p2 = scmp.lt.s32.totalorder %s945_s23, 5 }
   0x5   : > { %s1202_s25 = smov (%p27_p0, %s26_s25), 0 }
   0x6   : > { %p266_p3 = pnand %p764_p1, %p265_p2 }
   0x7   : > { %p304_p4 = scmp.lt.s32.totalorder (!%p266_p3), %s937_s21, 3  ;;  %p767_p5 = scmp.ne.s32.totalorder (!%p266_p3), %s937_s21, 0 }
   0x8   : > { %269 = sbr.rel (%p266_p3) target bundleno = 695 (0x2b7), region = 44 }
   0xf   : > { %s1005_s26 = scalar_select %p304_p4, %s937_s21, 3 }
  0x10   : > { %328 = sbr.rel (%p767_p5) target bundleno = 23 (0x17), region = 48  ;;  %vm329_vm0 = vcmask (!%p767_p5), 130048   ;;  %v947_v0 = vmov (!%p767_p5), 0.0  }
  0x11   : > { %s306_s29 = scalar_lea.vmem %s1191_s0, %s1005_s26  ;;  %s765_s30 = sshll.u32 %s1005_s26, 3  ;;  %330 = vst.msk [vmem:[#allocation2] sm:$0xff] (!%p767_p5), %vm329_vm0, %v947_v0 }
  0x12   : > { %s314_s9 = scalar_lea.vmem %s1192_s1, %s765_s30  ;;  %s1018_s12 = scalar_lea.vmem %s1193_s2, %s765_s30 }
  0x17 PF: > { %v334_v1 = vld [vmem:[%s1194_s3 + $0x8] sm:$0xff]  ;;  %v336_v2 = vld [vmem:[%s1194_s3 + $0x18] sm:$0xff]  ;;  %v333_v3 = vld [vmem:[%s1194_s3] sm:$0xff]  ;;  %v948_v6 = vmov 0.0   ;;  %vm337_vm1 = vcmask 130048   ;;  %vm949_vm2 = vmmov 0  }
  0x18   : > { %v819_v4 = vpack.c.bf16 %v336_v2, %v334_v1  ;;  %v335_v5 = vld [vmem:[%s1194_s3 + $0x10] sm:$0xff]  ;;  %405 = vmatprep.mubr.f32.mxu1 %v948_v6  ;;  %v413_v7 = vld [vmem:[%s1195_s4 + $0x8] sm:$0xff]  ;;  %v415_v9 = vld [vmem:[%s1195_s4 + $0x18] sm:$0xff]  ;;  %vm605_vm4 = vcmask 64512   ;;  %s950_s30 = smov [#allocation2]   ;;  %p1155_p6 = scmp.eq.s32.totalorder %s761_s24, 3 }
  0x19   : > { %v821_v8 = vpack.c.bf16 %v335_v5, %v333_v3  ;;  %v412_v10 = vld [vmem:[%s1195_s4] sm:$0xff]  ;;  %v414_v11 = vld [vmem:[%s1195_s4 + $0x10] sm:$0xff]  ;;  %v823_v13 = vpack.c.bf16 %v415_v9, %v413_v7  ;;  %v509_v15 = vld [vmem:[%s1196_s5 + $0x88] sm:$0xff]  ;;  %v595_v7 = vlaneseq  ;;  %s690_s7 = sshll.u32 %s950_s30, 4  ;;  %s691_s7 = int_to_ptr.vmem [resolvable:$true] %s690_s7 }
  0x1a   : > { %820 = vmatprep.subr.bf16.mxu1 %v819_v4  ;;  %v331_v12 = vld [vmem:[%s314_s9] sm:$0xff]  ;;  %v825_v16 = vpack.c.bf16 %v414_v11, %v412_v10  ;;  %v493_v19 = vld [vmem:[%s1196_s5 + $0x8] sm:$0xff]  ;;  %v510_v20 = vld [vmem:[%s1196_s5 + $0x90] sm:$0xff]  ;;  %s893_s26 = scalar_lea.vmem %s691_s7, 128  ;;  %p900_p10 = scmp.lt.s32.totalorder %s691_s7, %s691_s7 }
  0x1b   : > { %v508_v14 = vld [vmem:[%s1196_s5 + $0x80] sm:$0xff]  ;;  %822 = vmatpush1.bf16.msra.mxu1 %v821_v8  ;;  %v511_v22 = vld [vmem:[%s1196_s5 + $0x98] sm:$0xff]  ;;  %v494_v23 = vld [vmem:[%s1196_s5 + $0x10] sm:$0xff]  ;;  %v596_v8 = vshrl.u32 %v595_v7, 7  ;;  %p894_p7 = scmp.ne.s32.totalorder %s691_s7, %s893_s26  ;;  %p901_p11 = scmp.lt.s32.totalorder %s893_s26, %s893_s26 }
  0x1c   : > { %v827_v17 = vpack.c.bf16 %v509_v15, %v508_v14  ;;  %v492_v18 = vld [vmem:[%s1196_s5] sm:$0xff]  ;;  %824 = vmatprep.subr.bf16.mxu1 %v823_v13  ;;  %v495_v24 = vld [vmem:[%s1196_s5 + $0x18] sm:$0xff]  ;;  %v831_v25 = vpack.c.bf16 %v511_v22, %v510_v20  ;;  %v513_v27 = vld [vmem:[%s1196_s5 + $0xa8] sm:$0xff] }
  0x1d   : > { %v829_v21 = vpack.c.bf16 %v493_v19, %v492_v18  ;;  %v512_v26 = vld [vmem:[%s1196_s5 + $0xa0] sm:$0xff]  ;;  %v833_v28 = vpack.c.bf16 %v495_v24, %v494_v23  ;;  %v497_v32 = vld [vmem:[%s1196_s5 + $0x28] sm:$0xff]  ;;  %v514_v33 = vld [vmem:[%s1196_s5 + $0xb0] sm:$0xff]  ;;  %p895_p8 = pnand %p894_p7, %p1155_p6  ;;  %p902_p12 = por %p901_p11, %p900_p10 }
  0x1e   : > { %828 = vmatprep.subr.bf16.mxu0 %v827_v17  ;;  %768 = vmatmul.mubr.msk.f32.vlgmr.msra.gmra.mrb[0].mxu1 %vm337_vm1, %v331_v12  ;;  %v332_v29 = vld [vmem:[%s1018_s12] sm:$0xff]  ;;  %v835_v30 = vpack.c.bf16 %v513_v27, %v512_v26  ;;  %v515_v34 = vld [vmem:[%s1196_s5 + $0xb8] sm:$0xff]  ;;  %v498_v37 = vld [vmem:[%s1196_s5 + $0x30] sm:$0xff] }
  0x1f   : > { %830 = vmatpush3.bf16.msra.mxu0 %v829_v21  ;;  %826 = vmatpush1.bf16.msra.mxu1 %v825_v16  ;;  %v496_v31 = vld [vmem:[%s1196_s5 + $0x20] sm:$0xff]  ;;  %v839_v36 = vpack.c.bf16 %v515_v34, %v514_v33  ;;  %v499_v38 = vld [vmem:[%s1196_s5 + $0x38] sm:$0xff]  ;;  %v517_v40 = vld [vmem:[%s1196_s5 + $0xc8] sm:$0xff]  ;;  %p896_p9 = pneg %p895_p8 }
  0x20   : > { %483 = vmatprep.mubr.f32.mxu1 %v948_v6  ;;  %832 = vmatprep.subr.bf16.mxu0 %v831_v25  ;;  %v837_v35 = vpack.c.bf16 %v497_v32, %v496_v31  ;;  %v516_v39 = vld [vmem:[%s1196_s5 + $0xc0] sm:$0xff]  ;;  %v841_v41 = vpack.c.bf16 %v499_v38, %v498_v37  ;;  %v501_v44 = vld [vmem:[%s1196_s5 + $0x48] sm:$0xff]  ;;  %v518_v45 = vld [vmem:[%s1196_s5 + $0xd0] sm:$0xff] }
  0x21   : > { %814 = vmatprep.subr.mxu1 %v948_v6  ;;  %v843_v42 = vpack.c.bf16 %v517_v40, %v516_v39  ;;  %v500_v43 = vld [vmem:[%s1196_s5 + $0x40] sm:$0xff]  ;;  %v519_v46 = vld [vmem:[%s1196_s5 + $0xd8] sm:$0xff]  ;;  %v502_v49 = vld [vmem:[%s1196_s5 + $0x50] sm:$0xff]  ;;  %p903_p13 = pnand %p902_p12, %p896_p9 }
  0x22   : > { %769 = vmatmul.mubr.msk.f32.vlgmr.msra.gmra.mrb[2].mxu1 %vm337_vm1, %v332_v29  ;;  %v845_v47 = vpack.c.bf16 %v501_v44, %v500_v43  ;;  %v847_v48 = vpack.c.bf16 %v519_v46, %v518_v45  ;;  %v503_v50 = vld [vmem:[%s1196_s5 + $0x58] sm:$0xff]  ;;  %v520_v52 = vld [vmem:[%s1196_s5 + $0xe0] sm:$0xff]  ;;  %v521_v53 = vld [vmem:[%s1196_s5 + $0xe8] sm:$0xff] }
  0x23   : > { %834 = vmatpush3.bf16.msra.mxu0 %v833_v28  ;;  %v849_v51 = vpack.c.bf16 %v503_v50, %v502_v49  ;;  %v851_v54 = vpack.c.bf16 %v521_v53, %v520_v52  ;;  %v504_v55 = vld [vmem:[%s1196_s5 + $0x60] sm:$0xff]  ;;  %v505_v56 = vld [vmem:[%s1196_s5 + $0x68] sm:$0xff]  ;;  %v522_v58 = vld [vmem:[%s1196_s5 + $0xf0] sm:$0xff]  ;;  %816 = vmatprep.mubr.msk.f32.mxu1 %vm949_vm2, %v948_v6 }
  0x24   : > { %836 = vmatprep.subr.bf16.mxu0 %v835_v30  ;;  %v853_v57 = vpack.c.bf16 %v505_v56, %v504_v55  ;;  %v523_v59 = vld [vmem:[%s1196_s5 + $0xf8] sm:$0xff]  ;;  %v506_v61 = vld [vmem:[%s1196_s5 + $0x70] sm:$0xff]  ;;  %v770_v9 = vld [vmem:[%s306_s29] ss:$0 sm:$0xff] }
  0x25   : > { %v855_v60 = vpack.c.bf16 %v523_v59, %v522_v58  ;;  %v507_v62 = vld [vmem:[%s1196_s5 + $0x78] sm:$0xff]  ;;  %vm601_vm3 = vcmp.eq.s32.totalorder %v596_v8, %v770_v9  ;;  %v604_v14 = vld [vmem:[#allocation2] sm:$0xff] }
  0x26   : > { %v857_v63 = vpack.c.bf16 %v507_v62, %v506_v61  ;;  %v771_v13 = vsel %vm601_vm3, 1.0, %v948_v6 }
  0x27   : > { %838 = vmatpush3.bf16.msra.mxu0 %v837_v35 }
  0x28   : > { %840 = vmatprep.subr.bf16.mxu0 %v839_v36 }
  0x2b   : > { %842 = vmatpush3.bf16.msra.mxu0 %v841_v41 }
  0x2c   : > { %844 = vmatprep.subr.bf16.mxu0 %v843_v42 }
  0x2f   : > { %846 = vmatpush3.bf16.msra.mxu0 %v845_v47 }
  0x30   : > { %848 = vmatprep.subr.bf16.mxu0 %v847_v48 }
  0x33   : > { %850 = vmatpush3.bf16.msra.mxu0 %v849_v51 }
  0x34   : > { %852 = vmatprep.subr.bf16.mxu0 %v851_v54 }
  0x37   : > { %854 = vmatpush3.bf16.msra.mxu0 %v853_v57 }
  0x38   : > { %856 = vmatprep.subr.bf16.mxu0 %v855_v60 }
  0x3b   : > { %858 = vmatpush3.bf16.msra.mxu0 %v857_v63 }
  0xf1   : > { %v407_v0 = vpop.f32.mrb[0].mxu1 }
  0xf2   : > { %v409_v1 = vpop.f32.mrb[1].mxu1 }
  0xf5   : > { %v485_v2 = vpop.f32.mrb[2].mxu1 }
  0xf6   : > { %v490_v3 = vmul.f32 %v485_v2, %v407_v0  ;;  %v487_v4 = vpop.f32.mrb[3].mxu1 }
  0xf7   : > { %v491_v5 = vmul.f32 %v487_v4, %v409_v1 }
  0xf9   : > { %588 = vmatprep.mubr.f32.mxu0 %v491_v5 }
  0xfa   : > { %589 = vmatmul.mubr.f32.vlgmr.msra.gmra.mrb[0].mxu0 %v490_v3 }
 0x1cd   : > { %v809_v10 = vpop.f32.mrb[0].mxu0 }
 0x1ce   : > { %v810_v11 = vpop.f32.mrb[1].mxu0 }
 0x1cf   : > { %v811_v12 = vadd.f32 %v810_v11, %v809_v10 }
 0x1d1   : > { %815 = vmatpush3.msra.mxu1 %v811_v12 }
 0x1d2   : > { %817 = vmatmul.mubr.msk.f32.vlgmr.msra.gmra.mrb[4].mxu1 %vm605_vm4, %v771_v13 }
 0x2a5   : > { %v675_v15 = vpop.f32.mrb[4].mxu1 }
 0x2a6   : > { %v679_v16 = vadd.f32 %v675_v15, %v604_v14  ;;  %v818_v17 = vpop.f32.mrb[5].mxu1 }
 0x2a8   : > { %680 = vst.msk [vmem:[#allocation2] sm:$0xff] %vm337_vm1, %v679_v16 }
 0x2a9   : > { %906 = shalt.err (!%p903_p13)
}
 0x2aa   : > { %s907_s10 = scalar_lea.hbm %s1197_s6, 128 }
 0x2ab   : > { %p908_p0 = scmp.ne.s32.totalorder %s1197_s6, %s907_s10  ;;  %p913_p3 = scmp.lt.u32.totalorder %s907_s10, %s1197_s6 }
 0x2ad   : > { %p909_p1 = pnand %p908_p0, %p1155_p6 }
 0x2af   : > { %p910_p2 = pneg %p909_p1 }
 0x2b1   : > { %p915_p4 = pnand %p913_p3, %p910_p2 }
 0x2b3   : > { %918 = shalt.err (!%p915_p4)
}
 0x2b4   : > { %860 = dma.vmem_to_hbm [thread:$0]  (%p1155_p6), %s691_s7, 128, %s1197_s6, [#allocation3]  }
 0x2b5   : > { %932 = dma.done.wait (%p1155_p6), [#allocation3], 128  }
 0x2b6   : > { %934 = vsyncadd (%p1155_p6), [#allocation3], 4294967168 }
 0x2b7 PF: > { %s17_s23 = sadd.s32 1, %s945_s23   ;;  %s1199_s21 = smov %s941_s22 }
 0x2b8   : > { %p14_p5 = scmp.ge.s32.totalorder %s17_s23, 6   ;;  %s1200_s22 = smov %s1202_s25 }
 0x2ba   :  { %16 = sbr.rel (!%p14_p5) target bundleno = 2 (0x2), region = 82 }
 0x2c1   :  { %703 = vsyncpa [#allocation3], 1 }
 0x2c2   :  { %705 = vsyncpa [#allocation3 + $0x1], 1 }

</bundles_post_ra>
